<compile_context>
chip_gen: v5e
topology: v5e:2x2
jax: 0.10.0
libtpu: 0.0.40
codegen_flags: <defaults>
</compile_context>

<pallas_src>
import jax
import jax.numpy as jnp
from jax.experimental import pallas as pl
from jax.experimental.pallas import tpu as pltpu

THRESHOLD = 0.1
BN_EPS = 1e-5


def _add_threshold_kernel(x_ref, t_ref, w_ref, bias_ref, o_ref):
    # x_ref, t_ref, o_ref : (C, T)   w_ref : (C, C)   bias_ref : (C, 1)
    # 1x1 conv (with BN scale pre-folded into w): per-pixel channel matmul.
    conv = jnp.dot(w_ref[...], t_ref[...], preferred_element_type=jnp.float32)
    bn = conv + bias_ref[...]                    # folded BN bias, broadcast over lanes
    act = jnp.where(bn > THRESHOLD, bn, 0.0)     # F.threshold(x, thr, 0): keep iff > thr
    o_ref[...] = (x_ref[...].astype(jnp.float32) + act).astype(o_ref.dtype)


def _round_up(a, b):
    return ((a + b - 1) // b) * b


def add_threshold(x, threshold_map, conv_weight, gamma, beta, running_mean,
                  running_var, *, tile_hw=None):
    """x, threshold_map: NCHW arrays.  conv_weight: (C, C, 1, 1)."""
    N, C, H, W = x.shape
    HW = H * W

    # NCHW -> (N, C, HW): free reshape, pixels land on the lane axis.
    x3 = x.reshape(N, C, HW)
    t3 = threshold_map.reshape(N, C, HW)

    # Fold BN (inference) into the conv weight / per-channel bias:
    #   y = (w @ t - mean) * gamma/sqrt(var+eps) + beta
    #     = (w * scale[:, None]) @ t + (beta - mean * scale)
    w = conv_weight[:, :, 0, 0].astype(jnp.float32)                  # (Cout, Cin)
    inv_std = 1.0 / jnp.sqrt(running_var.astype(jnp.float32) + BN_EPS)
    scale = gamma.astype(jnp.float32) * inv_std
    w_scaled = (w * scale[:, None]).astype(threshold_map.dtype)      # (C, C)
    bias = (beta.astype(jnp.float32)
            - running_mean.astype(jnp.float32) * scale).reshape(C, 1)

    # Choose a lane-aligned pixel tile (~1 MiB per input block); pad HW if needed.
    # 3 streamed arrays x 2 buffers ~= 6 MiB, comfortably under the default
    # scoped VMEM limit on v5e/v6e/v7x (no vmem_limit_bytes override needed).
    itemsize = jnp.dtype(x.dtype).itemsize
    if tile_hw is None:
        tile_hw = max(128, ((1 << 20) // (C * itemsize)) // 128 * 128)
    hw_aligned = _round_up(HW, 128)
    tile = min(_round_up(tile_hw, 128), hw_aligned)
    # Shrink the tile if it would force excessive padding of the pixel axis.
    while tile > 128 and _round_up(HW, tile) - HW > max(HW // 8, 127):
        tile = _round_up(tile // 2, 128)
    hw_pad = _round_up(HW, tile)
    if hw_pad != HW:
        x3 = jnp.pad(x3, ((0, 0), (0, 0), (0, hw_pad - HW)))
        t3 = jnp.pad(t3, ((0, 0), (0, 0), (0, hw_pad - HW)))

    grid = (N, hw_pad // tile)

    out3 = pl.pallas_call(
        _add_threshold_kernel,
        out_shape=jax.ShapeDtypeStruct((N, C, hw_pad), x.dtype),
        grid_spec=pltpu.PrefetchScalarGridSpec(
            num_scalar_prefetch=0,
            grid=grid,
            in_specs=[
                pl.BlockSpec((None, C, tile), lambda n, j: (n, 0, j)),  # x (residual)
                pl.BlockSpec((None, C, tile), lambda n, j: (n, 0, j)),  # threshold_map
                pl.BlockSpec((C, C), lambda n, j: (0, 0)),              # folded conv weight
                pl.BlockSpec((C, 1), lambda n, j: (0, 0)),              # folded BN bias
            ],
            out_specs=pl.BlockSpec((None, C, tile), lambda n, j: (n, 0, j)),
        ),
        compiler_params=pltpu.CompilerParams(
            dimension_semantics=("parallel", "parallel")),
    )(x3, t3, w_scaled, bias)

    if hw_pad != HW:
        out3 = out3[:, :, :HW]
    return out3.reshape(N, C, H, W)


def _reference(x, threshold_map, conv_weight, gamma, beta, running_mean, running_var):
    """Plain-JAX reference for sanity checking (matches PyTorch eval-mode forward)."""
    w = conv_weight[:, :, 0, 0]                       # (Cout, Cin)
    conv = jnp.einsum("oc,nchw->nohw", w, threshold_map)
    inv_std = 1.0 / jnp.sqrt(running_var + BN_EPS)
    bn = (conv - running_mean[None, :, None, None]) * inv_std[None, :, None, None] \
        * gamma[None, :, None, None] + beta[None, :, None, None]
    act = jnp.where(bn > THRESHOLD, bn, 0.0)
    return x + act


if __name__ == "__main__":
    key = jax.random.PRNGKey(0)
    N, C, H, W = 2, 8, 16, 16

    k_x, k_t, k_w, k_g, k_b, k_m, k_v = jax.random.split(key, 7)
    x = jax.random.normal(k_x, (N, C, H, W), dtype=jnp.float32)
    threshold_map = jax.random.normal(k_t, (N, C, H, W), dtype=jnp.float32)

    # Conv2d(C, C, 1, bias=False) weight: (C, C, 1, 1), deterministic init
    conv_weight = 0.3 * jax.random.normal(k_w, (C, C, 1, 1), dtype=jnp.float32)
    # BatchNorm2d(C) params / running stats, deterministic non-trivial values
    gamma = 1.0 + 0.1 * jax.random.normal(k_g, (C,), dtype=jnp.float32)
    beta = 0.05 * jax.random.normal(k_b, (C,), dtype=jnp.float32)
    running_mean = 0.1 * jax.random.normal(k_m, (C,), dtype=jnp.float32)
    running_var = jnp.abs(1.0 + 0.1 * jax.random.normal(k_v, (C,), dtype=jnp.float32))

    out = add_threshold(x, threshold_map, conv_weight, gamma, beta,
                        running_mean, running_var)
    out = jax.block_until_ready(out)

    ref = _reference(x, threshold_map, conv_weight, gamma, beta,
                     running_mean, running_var)
    assert out.shape == (N, C, H, W)
    assert jnp.allclose(out, ref, atol=2e-5, rtol=1e-5), "mismatch vs reference"

    print("KERNEL_OK")
</pallas_src>

<mosaic_0001>
module attributes {stable_mosaic.version = 11 : i64} {
  func.func @_add_threshold_kernel(%arg0: i32, %arg1: i32, %arg2: memref<1x8x256xf32, #tpu.memory_space<vmem>>, %arg3: memref<1x8x256xf32, #tpu.memory_space<vmem>>, %arg4: memref<8x8xf32, #tpu.memory_space<vmem>>, %arg5: memref<8x1xf32, #tpu.memory_space<vmem>>, %arg6: memref<1x8x256xf32, #tpu.memory_space<vmem>>) attributes {dimension_semantics = [#tpu.dimension_semantics<parallel>, #tpu.dimension_semantics<parallel>], iteration_bounds = array<i64: 2, 1>, scalar_prefetch = 0 : i64, scratch_operands = 0 : i64, tpu.core_type = #tpu.core_type<tc>, window_params = [{transform_indices = @transform_0, window_bounds = array<i64: 1, 8, 256>}, {transform_indices = @transform_1, window_bounds = array<i64: 1, 8, 256>}, {pipeline_mode = #tpu.pipeline_mode<synchronous>, transform_indices = @transform_2, window_bounds = array<i64: 8, 8>}, {pipeline_mode = #tpu.pipeline_mode<synchronous>, transform_indices = @transform_3, window_bounds = array<i64: 8, 1>}, {transform_indices = @transform_4, window_bounds = array<i64: 1, 8, 256>}]} {
    %c0 = arith.constant 0 : index
    %c0_0 = arith.constant 0 : index
    %0 = vector.load %arg4[%c0, %c0_0] : memref<8x8xf32, #tpu.memory_space<vmem>>, vector<8x8xf32>
    %c0_1 = arith.constant 0 : index
    %c0_2 = arith.constant 0 : index
    %c0_3 = arith.constant 0 : index
    %1 = vector.load %arg3[%c0_1, %c0_2, %c0_3] : memref<1x8x256xf32, #tpu.memory_space<vmem>>, vector<1x8x256xf32>
    %2 = vector.shape_cast %1 : vector<1x8x256xf32> to vector<8x256xf32>
    %cst = arith.constant dense<0.000000e+00> : vector<8x256xf32>
    %3 = tpu.matmul %0, %2, %cst {dimension_numbers = #tpu.dot_dimension_numbers<[1], [0], [0], [1], [0, 0, 1, 1], [], []>} : vector<8x8xf32>, vector<8x256xf32>, vector<8x256xf32> -> vector<8x256xf32>
    %c0_4 = arith.constant 0 : index
    %c0_5 = arith.constant 0 : index
    %4 = vector.load %arg5[%c0_4, %c0_5] : memref<8x1xf32, #tpu.memory_space<vmem>>, vector<8x1xf32>
    %5 = vector.broadcast %4 : vector<8x1xf32> to vector<8x256xf32>
    %6 = arith.addf %3, %5 : vector<8x256xf32>
    %cst_6 = arith.constant 1.000000e-01 : f32
    %7 = vector.broadcast %cst_6 : f32 to vector<8x256xf32>
    %8 = arith.cmpf ogt, %6, %7 : vector<8x256xf32>
    %cst_7 = arith.constant 0.000000e+00 : f32
    %9 = vector.broadcast %cst_7 : f32 to vector<8x256xf32>
    %10 = arith.select %8, %6, %9 : vector<8x256xi1>, vector<8x256xf32>
    %c0_8 = arith.constant 0 : index
    %c0_9 = arith.constant 0 : index
    %c0_10 = arith.constant 0 : index
    %11 = vector.load %arg2[%c0_8, %c0_9, %c0_10] : memref<1x8x256xf32, #tpu.memory_space<vmem>>, vector<1x8x256xf32>
    %12 = vector.shape_cast %11 : vector<1x8x256xf32> to vector<8x256xf32>
    %13 = arith.addf %12, %10 : vector<8x256xf32>
    %c0_11 = arith.constant 0 : index
    %c0_12 = arith.constant 0 : index
    %c0_13 = arith.constant 0 : index
    %14 = vector.load %arg6[%c0_11, %c0_12, %c0_13] : memref<1x8x256xf32, #tpu.memory_space<vmem>>, vector<1x8x256xf32>
    %15 = vector.shape_cast %14 : vector<1x8x256xf32> to vector<8x256xf32>
    %16 = vector.shape_cast %13 : vector<8x256xf32> to vector<1x8x256xf32>
    tpu.vector_store %arg6[%c0_11, %c0_12, %c0_13], %16 {strides = array<i32>} : memref<1x8x256xf32, #tpu.memory_space<vmem>>, vector<1x8x256xf32>,
    return
  }
  func.func @transform_0(%arg0: i32, %arg1: i32) -> (i32, i32, i32) {
    %c0_i32 = arith.constant 0 : i32
    %c0_i32_0 = arith.constant 0 : i32
    return %arg0, %c0_i32, %arg1 : i32, i32, i32
  }
  func.func @transform_1(%arg0: i32, %arg1: i32) -> (i32, i32, i32) {
    %c0_i32 = arith.constant 0 : i32
    %c0_i32_0 = arith.constant 0 : i32
    return %arg0, %c0_i32, %arg1 : i32, i32, i32
  }
  func.func @transform_2(%arg0: i32, %arg1: i32) -> (i32, i32) {
    %c0_i32 = arith.constant 0 : i32
    %c0_i32_0 = arith.constant 0 : i32
    %c0_i32_1 = arith.constant 0 : i32
    return %c0_i32, %c0_i32_0 : i32, i32
  }
  func.func @transform_3(%arg0: i32, %arg1: i32) -> (i32, i32) {
    %c0_i32 = arith.constant 0 : i32
    %c0_i32_0 = arith.constant 0 : i32
    %c0_i32_1 = arith.constant 0 : i32
    return %c0_i32, %c0_i32_0 : i32, i32
  }
  func.func @transform_4(%arg0: i32, %arg1: i32) -> (i32, i32, i32) {
    %c0_i32 = arith.constant 0 : i32
    %c0_i32_0 = arith.constant 0 : i32
    return %arg0, %c0_i32, %arg1 : i32, i32, i32
  }
}

</mosaic_0001>

<bundles_post_ra>
// kernel: tpu_custom_call.1
= control target key start
LH: loop header
LB: loop body
LE: loop exit
PB: predicated region body
PF: predicated region fallthrough
CT: control target
= control target key end

     0   :  { %9 = vsyncpa [#allocation3], 0  ;;  %s879_s0 = inlined_call_operand.hbm [shape: f32[2,8,256], index: 0, kind: input, shape index: {}]   ;;  %s880_s1 = inlined_call_operand.hbm [shape: f32[2,8,256], index: 1, kind: input, shape index: {}]   ;;  %s881_s2 = inlined_call_operand.vmem [shape: f32[8,8], index: 2, kind: input, shape index: {}]   ;;  %s882_s3 = inlined_call_operand.vmem [shape: f32[8,1], index: 3, kind: input, shape index: {}]   ;;  %s883_s4 = inlined_call_operand.hbm [shape: f32[2,8,256], index: 4, kind: output, shape index: {}]  }
   0x1   :  { %11 = vsyncpa [#allocation3 + $0x1], 0 }
   0x2   :  { %12 = vsyncpa [#allocation6], 0 }
   0x3   :  { %14 = vsyncpa [#allocation6 + $0x1], 0 }
   0x4   :  { %15 = vsyncpa [#allocation4], 0 }
   0x5   :  { %17 = vsyncpa [#allocation4 + $0x1], 0  ;;  %s740_s15 = smov 0   ;;  %s742_s16 = smov 0  }
   0x6   :  { %s744_s17 = smov 0   ;;  %s746_s18 = smov 0  }
   0x7   :  { %s748_s19 = smov 0   ;;  %s750_s20 = smov 0  }
   0x8 LB: > { %s473_s21 = sadd.s32 4294967295, %s712_s20   ;;  %s474_s22 = sadd.s32 4294967294, %s712_s20   ;;  %s712_s20 = sphi %s750_s20, %s23_s20   ;;  %s708_s19 = sphi %s748_s19, %s895_s19   ;;  %s704_s18 = sphi %s746_s18, %s894_s18   ;;  %s700_s17 = sphi %s744_s17, %s893_s17   ;;  %s696_s16 = sphi %s742_s16, %s892_s16   ;;  %s692_s15 = sphi %s740_s15, %s891_s15  }
   0x9   : > { %s35_s23 = sadd.s32 1, %s708_s19  ;;  %s44_s24 = sadd.s32 1, %s700_s17 }
   0xa   : > { %p37_p0 = scmp.ge.s32.totalorder %s35_s23, 2  ;;  %p51_p1 = scmp.ne.s32.totalorder %s700_s17, %s696_s16 }
   0xb   : > { %p52_p2 = scmp.eq.s32.totalorder %s712_s20, 0  ;;  %p57_p3 = scmp.ne.s32.totalorder %s696_s16, %s692_s15 }
   0xc   : > { %s897_s23 = smov (%p37_p0, %s35_s23), 0  ;;  %p58_p5 = scmp.eq.s32.totalorder %s473_s21, 0 }
   0xd   : > { %885 = sst [smem:[#allocation11_spill]] %s897_s23  ;;  %p781_p4 = por %p52_p2, %p51_p1 }
   0xe   : > { %s39_s26 = ssub.s32 %s708_s19, %s897_s23  ;;  %p153_p6 = scmp.eq.s32.totalorder %s473_s21, 1 }
   0xf   : > { %p42_p7 = scmp.eq.s32.totalorder %s39_s26, 0  ;;  %p787_p8 = por %p58_p5, %p57_p3 }
  0x10   : > { %p791_p9 = por %p153_p6, %p51_p1  ;;  %p159_p10 = scmp.eq.s32.totalorder %s474_s22, 1 }
  0x11   : > { %s796_s29 = scalar_select %p42_p7, %s700_s17, %s44_s24  }
  0x12   : > { %p798_p11 = por %p159_p10, %p57_p3  ;;  %p476_p12 = scmp.ge.s32.totalorder %s712_s20, 2 }
  0x13   : > { %p514_p13 = scmp.lt.s32.totalorder %s712_s20, 2  ;;  %s185_s5 = sand.u32 1, %s700_s17  }
  0x14   : > { %s477_s6 = sshll.u32 %s185_s5, 4  ;;  %s494_s7 = sshll.u32 %s708_s19, 4 }
  0x15   : > { %s196_s10 = scalar_lea.hbm %s879_s0, %s494_s7  ;;  %s189_s11 = scalar_lea.vmem [#allocation2], %s477_s6 }
  0x16   : > { %s200_s12 = sshll.u32 %s189_s11, 4  ;;  %s198_s13 = sshll.u32 %s196_s10, 4  ;;  %s201_s12 = int_to_ptr.vmem [resolvable:$true] %s200_s12  ;;  %s199_s13 = int_to_ptr.hbm [resolvable:$true] %s198_s13 }
  0x17   : > { %p504_p0 = pnand %p514_p13, %p781_p4  ;;  %p483_p1 = scmp.ge.s32.totalorder %s712_s20, 1 }
  0x18   : > { %p227_p2 = scmp.lt.s32.totalorder %s712_s20, 3  ;;  %s186_s14 = scalar_lea.sflag [#allocation3], %s185_s5 }
  0x19   : > { %506 = dma.hbm_to_vmem [thread:$0]  (!%p504_p0), %s199_s13, 256, %s201_s12, %s186_s14  }
  0x1a   : > { %p228_p3 = pnand %p483_p1, %p227_p2  ;;  %s218_s24 = scalar_lea.hbm %s880_s1, %s494_s7 }
  0x1b   : > { %s211_s26 = scalar_lea.vmem [#allocation5], %s477_s6  ;;  %s220_s8 = sshll.u32 %s218_s24, 4  ;;  %s221_s8 = int_to_ptr.hbm [resolvable:$true] %s220_s8 }
  0x1c   : > { %s222_s23 = sshll.u32 %s211_s26, 4  ;;  %s208_s9 = scalar_lea.sflag [#allocation6], %s185_s5  ;;  %s223_s23 = int_to_ptr.vmem [resolvable:$true] %s222_s23 }
  0x1d   : > { %509 = dma.hbm_to_vmem [thread:$0]  (!%p504_p0), %s221_s8, 256, %s223_s23, %s208_s9  }
  0x1e   : > { %231 = sbr.rel (%p228_p3) target bundleno = 176 (0xb0), region = 36  ;;  %s817_s25 = sand.u32 (!%p228_p3), 1, %s696_s16  }
  0x1f   : > { %s820_s10 = sshll.u32 (!%p228_p3), %s817_s25, 4  ;;  %s234_s11 = scalar_lea.sflag (!%p228_p3), [#allocation3], %s817_s25 }
  0x20   : > { %s237_s12 = scalar_lea.vmem (!%p228_p3), [#allocation2], %s820_s10 }
  0x23   : > { %679 = dma.done.wait (%p787_p8), %s234_s11, 256  }
  0x24   : > { %681 = vsyncadd (%p787_p8), %s234_s11, 4294967040  ;;  %s244_s23 = scalar_lea.sflag [#allocation6], %s817_s25  ;;  %s247_s5 = scalar_lea.vmem [#allocation5], %s820_s10 }
  0x25   : > { %683 = dma.done.wait (%p787_p8), %s244_s23, 256  }
  0x26   : > { %685 = vsyncadd (%p787_p8), %s244_s23, 4294967040  ;;  %v714_v0 = vmov 0   ;;  %vm290_vm0 = vcmask 64512   ;;  %v282_v1 = vld [vmem:[%s247_s5] sm:$0xff]  ;;  %v283_v2 = vld [vmem:[%s247_s5 + $0x8] sm:$0xff]  ;;  %s496_s27 = sshll.u32 %s704_s18, 4 }
  0x27   : > { %565 = vset.pattern.permute.xlu0 %v714_v0  ;;  %v281_v3 = vld [vmem:[%s881_s2] sm:$0xff]  ;;  %309 = vmatpush.msra.mxu0 %v282_v1  ;;  %s358_s24 = scalar_lea.hbm %s883_s4, %s496_s27  ;;  %v339_v11 = vld [vmem:[%s237_s12 + $0x8] sm:$0xff]  ;;  %s277_s26 = scalar_lea.vmem [#allocation7], %s820_s10 }
  0x28   : > { %329 = vmatpush.msra.mxu1 %v283_v2  ;;  %v284_v4 = vld [vmem:[%s882_s3] sm:$0xff]  ;;  %487 = vmatmul.msk.f32.vlgmr.msra.gmra.mxu0 %vm290_vm0, %v281_v3  ;;  %s360_s8 = sshll.u32 %s277_s26, 4  ;;  %s362_s9 = sshll.u32 %s358_s24, 4  ;;  %s361_s8 = int_to_ptr.vmem [resolvable:$true] %s360_s8  ;;  %s363_s9 = int_to_ptr.hbm [resolvable:$true] %s362_s9 }
  0x29   : > { %488 = vmatmul.msk.f32.vlgmr.msra.gmra.mxu1 %vm290_vm0, %v281_v3  ;;  %287 = vperm.xlu0 %565, %v284_v4   ;;  %v338_v10 = vld [vmem:[%s237_s12] sm:$0xff]  ;;  %s345_s18 = scalar_lea.sflag [#allocation4], %s817_s25  ;;  %s640_s11 = sshra.s32 %s363_s9, 4  ;;  %s641_s11 = int_to_ptr.hbm [resolvable:$true] %s640_s11 }
  0x2a   : > { %s642_s23 = scalar_lea.hbm %s641_s11, 16  ;;  %s646_s5 = scalar_lea.hbm %s883_s4, 32 }
  0x2b   : > { %p643_p4 = scmp.ne.s32.totalorder %s641_s11, %s642_s23  ;;  %p647_p7 = scmp.lt.s32.totalorder %s641_s11, %s883_s4 }
  0x2c   : > { %p648_p8 = scmp.lt.s32.totalorder %s646_s5, %s642_s23 }
  0x2d   : > { %p644_p5 = pnand %p643_p4, %p791_p9 }
  0x2e   : > { %p649_p10 = por %p648_p8, %p647_p7 }
  0x2f   : > { %p645_p6 = pneg %p644_p5 }
  0x31   : > { %p650_p13 = pnand %p649_p10, %p645_p6 }
  0x9b   : > { %v288_v5 = vpop.permute.xlu0 %287 }
  0xa5   : > { %v311_v6 = vpop.f32.mrf.mxu0 }
  0xa6   : > { %v331_v7 = vpop.f32.mrf.mxu1  ;;  %v312_v8 = vadd.f32 %v311_v6, %v288_v5 }
  0xa7   : > { %v332_v9 = vadd.f32 %v331_v7, %v288_v5 }
  0xa8   : > { %vm334_vm1 = vcmp.gt.f32.partialorder %v312_v8, 0.1 }
  0xa9   : > { %vm335_vm2 = vcmp.gt.f32.partialorder %v332_v9, 0.1  ;;  %v336_v12 = vsel %vm334_vm1, %v312_v8, 0.0 }
  0xaa   : > { %v337_v13 = vsel %vm335_vm2, %v332_v9, 0.0  ;;  %v340_v14 = vadd.f32 %v338_v10, %v336_v12 }
  0xab   : > { %v341_v15 = vadd.f32 %v339_v11, %v337_v13 }
  0xac   : > { %342 = vst [vmem:[%s277_s26] sm:$0xff] %v340_v14 }
  0xad   : > { %343 = vst [vmem:[%s277_s26 + $0x8] sm:$0xff] %v341_v15 }
  0xae   : > { %653 = shalt.err (!%p650_p13)
}
  0xaf   : > { %501 = dma.vmem_to_hbm [thread:$0]  (%p791_p9), %s361_s8, 256, %s363_s9, %s345_s18  }
  0xb0 PF: > { %s374_s25 = sand.u32 1, %s692_s15   ;;  %p511_p0 = pnand %p476_p12, %p798_p11 }
  0xb1   : > { %s375_s13 = scalar_lea.sflag [#allocation4], %s374_s25 }
  0xb2   : > { %p512_p1 = pneg %p511_p0 }
  0xb4   : > { %687 = dma.done.wait (%p512_p1), %s375_s13, 256  }
  0xb5   : > { %689 = vsyncadd (%p512_p1), %s375_s13, 4294967040  ;;  %s23_s20 = sadd.s32 1, %s712_s20   ;;  %s890_s28 = sld [smem:[#allocation11_spill]] }
  0xb6   : > { %p20_p2 = scmp.ge.s32.totalorder %s23_s20, 4   ;;  %s891_s15 = smov %s696_s16 }
  0xb7   : > { %s892_s16 = smov %s700_s17  ;;  %s893_s17 = smov %s796_s29 }
  0xb8   : > { %s894_s18 = smov %s708_s19  ;;  %22 = sbr.rel (!%p20_p2) target bundleno = 8 (0x8), region = 94 }
  0xbb   : > { %s895_s19 = smov %s890_s28 }
  0xbd   :  { %381 = vsyncpa [#allocation3], 1 }
  0xbe   :  { %383 = vsyncpa [#allocation3 + $0x1], 1 }
  0xbf   :  { %384 = vsyncpa [#allocation6], 1 }
  0xc0   :  { %386 = vsyncpa [#allocation6 + $0x1], 1 }
  0xc1   :  { %387 = vsyncpa [#allocation4], 1 }
  0xc2   :  { %389 = vsyncpa [#allocation4 + $0x1], 1 }

</bundles_post_ra>
